<compile_context>
chip_gen: v5e
topology: v5e:2x2
jax: 0.10.0
libtpu: 0.0.40
codegen_flags: <defaults>
</compile_context>

<pallas_src>
import functools
import math

import jax
import jax.numpy as jnp
from jax.experimental import pallas as pl
from jax.experimental.pallas import tpu as pltpu


def _round_up(v, m):
    return (v + m - 1) // m * m


# ---------------------------------------------------------------------------
# Kernel 1: one GCN layer.
#   out[i, :] = act( d_i * sum_k A[i, k] * x_scaled[k, :] ) @ W + b   (x pre-scaled by d_k)
# grid = (row tiles "parallel", aggregation tiles "arbitrary"); reduction axis last.
# ---------------------------------------------------------------------------
def _gcn_layer_kernel(adj_ref, x_ref, drow_ref, w_ref, b_ref, out_ref, acc_ref,
                      *, apply_relu, scale_output):
    k = pl.program_id(1)

    @pl.when(k == 0)
    def _init():
        acc_ref[...] = jnp.zeros_like(acc_ref)

    # int8 adjacency tile -> bf16 just before the MXU dot; f32 VMEM accumulator.
    a = adj_ref[...].astype(jnp.bfloat16)
    acc_ref[...] += jnp.dot(a, x_ref[...], preferred_element_type=jnp.float32)

    @pl.when(k == pl.num_programs(1) - 1)
    def _finalize():
        agg = acc_ref[...] * drow_ref[...]                     # D^-1/2 on target rows (f32)
        h = jnp.dot(agg.astype(jnp.bfloat16), w_ref[...],
                    preferred_element_type=jnp.float32) + b_ref[...]
        if apply_relu:
            h = jnp.maximum(h, 0.0)
        if scale_output:
            # pre-scale this layer's output by D^-1/2 so the next layer's aggregation
            # needs no per-tile column scaling (source-side factor already folded in).
            h = h * drow_ref[...]
        out_ref[...] = h.astype(out_ref.dtype)


def _gcn_layer(adj_i8, dinv, x, w, b, *, apply_relu, scale_output, out_dtype, tm, tk):
    np_ = adj_i8.shape[0]
    cp = x.shape[1]
    hp = w.shape[1]
    kernel = functools.partial(_gcn_layer_kernel, apply_relu=apply_relu,
                               scale_output=scale_output)
    return pl.pallas_call(
        kernel,
        out_shape=jax.ShapeDtypeStruct((np_, hp), out_dtype),
        grid=(np_ // tm, np_ // tk),
        in_specs=[
            pl.BlockSpec((tm, tk), lambda i, k: (i, k)),   # adjacency tile (int8 in HBM)
            pl.BlockSpec((tk, cp), lambda i, k: (k, 0)),   # pre-scaled source features (bf16)
            pl.BlockSpec((tm, 1), lambda i, k: (i, 0)),    # D^-1/2 for target rows (f32)
            pl.BlockSpec((cp, hp), lambda i, k: (0, 0)),   # weight (VMEM resident)
            pl.BlockSpec((1, hp), lambda i, k: (0, 0)),    # bias (VMEM resident)
        ],
        out_specs=pl.BlockSpec((tm, hp), lambda i, k: (i, 0)),
        scratch_shapes=[pltpu.VMEM((tm, cp), jnp.float32)],
        compiler_params=pltpu.CompilerParams(
            dimension_semantics=("parallel", "arbitrary"),
            vmem_limit_bytes=48 * 1024 * 1024),            # headroom for 256-wide tiles
    )(adj_i8, x, dinv, w, b)


# ---------------------------------------------------------------------------
# Kernel 2: per-edge scores  sigmoid(<h2[src_e], h2[tgt_e]>), lane-dense (1, te) output.
# src/tgt indices are scalar-prefetched into SMEM; the gather+product loop is unrolled
# so scalar reads, dynamic-slice loads and the row product/store overlap.
# ---------------------------------------------------------------------------
def _edge_score_kernel(src_ref, tgt_ref, h_ref, out_ref, pbuf, *, te):
    e0 = pl.program_id(0) * te

    def gather(i, carry):
        s = src_ref[e0 + i]
        t = tgt_ref[e0 + i]
        pbuf[pl.ds(i, 1), :] = h_ref[pl.ds(s, 1), :] * h_ref[pl.ds(t, 1), :]
        return carry

    jax.lax.fori_loop(0, te, gather, 0, unroll=8)

    # contract over H with implicit ones @ P^T -> lane-dense (1, te) on the MXU
    ones = jnp.ones((1, pbuf.shape[1]), jnp.float32)
    scores = jax.lax.dot_general(ones, pbuf[...], (((1,), (1,)), ((), ())),
                                 preferred_element_type=jnp.float32)
    out_ref[...] = jax.nn.sigmoid(scores)


def _edge_scores(h, src_idx, tgt_idx, *, te):
    np_, hp = h.shape
    ep = src_idx.shape[0]
    kernel = functools.partial(_edge_score_kernel, te=te)
    grid_spec = pltpu.PrefetchScalarGridSpec(
        num_scalar_prefetch=2,
        grid=(ep // te,),
        in_specs=[pl.BlockSpec((np_, hp), lambda e, src, tgt: (0, 0))],
        out_specs=pl.BlockSpec((1, te), lambda e, src, tgt: (0, e)),
        scratch_shapes=[pltpu.VMEM((te, hp), jnp.float32)],
    )
    return pl.pallas_call(
        kernel,
        out_shape=jax.ShapeDtypeStruct((1, ep), jnp.float32),
        grid_spec=grid_spec,
        compiler_params=pltpu.CompilerParams(
            dimension_semantics=("parallel",),
            vmem_limit_bytes=48 * 1024 * 1024),
    )(src_idx, tgt_idx, h)


# ---------------------------------------------------------------------------
# Wrapper (glue in plain JAX): builds A+I directly in int8 (one scatter pass),
# computes D^-1/2 from the edge list (no f32 NxN temp), folds the source-side
# D^-1/2 into X, zero-pads to 128-lane multiples.
# ---------------------------------------------------------------------------
def link_prediction_gnn(x, edge_index, w1, b1, w2, b2, *, tm=256, tk=256, te=512):
    n, c = x.shape
    hdim = w1.shape[1]
    e = edge_index.shape[1]
    src = edge_index[0].astype(jnp.int32)
    tgt = edge_index[1].astype(jnp.int32)

    tile = (tm * tk) // math.gcd(tm, tk)            # lcm: robust when tm != tk
    np_ = _round_up(n, tile)
    cp = _round_up(c, 128)
    hp = _round_up(hdim, 128)
    te_eff = min(te, _round_up(e, 128))             # keep tiny edge sets cheap
    ep = _round_up(e, te_eff)

    # A + I in one scatter pass (PyG GCNConv semantics: duplicate edges accumulate,
    # one self loop per node). Stored int8 to halve the dominant HBM stream.
    # NOTE: exact only while duplicate-edge multiplicity (+1 self loop) <= 127.
    # TODO(synk): for very large N a dense (N,N) adjacency should be replaced by an
    # edge-list segment-sum aggregation; dense-matmul form kept here.
    loops = jnp.arange(n, dtype=jnp.int32)
    rows = jnp.concatenate([tgt, loops])
    cols = jnp.concatenate([src, loops])
    adj = jnp.zeros((np_, np_), jnp.int8).at[rows, cols].add(1)
    deg = jnp.zeros((np_, 1), jnp.float32).at[rows, 0].add(1.0)      # row sums of A+I
    dinv = jnp.where(deg > 0, jax.lax.rsqrt(deg), 0.0)               # (np_, 1) f32

    # fold source-side D^-1/2 into X once (fused with the padding/cast pass)
    x_scaled = x.astype(jnp.float32) * dinv[:n]
    x_p = jnp.zeros((np_, cp), jnp.bfloat16).at[:n, :c].set(x_scaled.astype(jnp.bfloat16))
    w1_p = jnp.zeros((cp, hp), jnp.bfloat16).at[:c, :hdim].set(w1.astype(jnp.bfloat16))
    w2_p = jnp.zeros((hp, hp), jnp.bfloat16).at[:hdim, :hdim].set(w2.astype(jnp.bfloat16))
    b1_p = jnp.zeros((1, hp), jnp.float32).at[0, :hdim].set(b1.astype(jnp.float32))
    b2_p = jnp.zeros((1, hp), jnp.float32).at[0, :hdim].set(b2.astype(jnp.float32))

    src_p = jnp.zeros((ep,), jnp.int32).at[:e].set(src)
    tgt_p = jnp.zeros((ep,), jnp.int32).at[:e].set(tgt)

    # GCN layer 1 (+ReLU); output is pre-scaled by D^-1/2 for layer 2's aggregation.
    # F.dropout(training=False) is identity.
    # TODO(synk): training-mode dropout not implemented; inference semantics only.
    h1 = _gcn_layer(adj, dinv, x_p, w1_p, b1_p, apply_relu=True, scale_output=True,
                    out_dtype=jnp.bfloat16, tm=tm, tk=tk)
    # GCN layer 2 (keep f32 output for the edge dot-products).
    h2 = _gcn_layer(adj, dinv, h1, w2_p, b2_p, apply_relu=False, scale_output=False,
                    out_dtype=jnp.float32, tm=tm, tk=tk)

    scores = _edge_scores(h2, src_p, tgt_p, te=te_eff)               # (1, ep) lane-dense
    return scores[0, :e]


def _reference(x, edge_index, w1, b1, w2, b2):
    n = x.shape[0]
    src, tgt = edge_index[0], edge_index[1]
    adj = jnp.zeros((n, n), jnp.float32).at[tgt, src].add(1.0) + jnp.eye(n)
    deg = jnp.sum(adj, axis=1)
    dinv = jnp.where(deg > 0, 1.0 / jnp.sqrt(deg), 0.0)
    a_hat = dinv[:, None] * adj * dinv[None, :]
    h = jnp.maximum(a_hat @ (x @ w1) + b1, 0.0)
    h2 = a_hat @ (h @ w2) + b2
    s = jnp.sum(h2[src] * h2[tgt], axis=-1)
    return jax.nn.sigmoid(s)


if __name__ == "__main__":
    N = 16            # number of nodes
    IN_CH = 8         # in_channels
    HID = 16          # hidden_channels (module default)
    E = 32            # number of edges

    key = jax.random.PRNGKey(0)
    k_x, k_e1, k_e2, k_w1, k_w2 = jax.random.split(key, 5)

    x = jax.random.normal(k_x, (N, IN_CH), dtype=jnp.float32)
    edge_src = jax.random.randint(k_e1, (E,), 0, N, dtype=jnp.int32)
    edge_tgt = jax.random.randint(k_e2, (E,), 0, N, dtype=jnp.int32)
    edge_index = jnp.stack([edge_src, edge_tgt], axis=0)

    w1 = jax.random.normal(k_w1, (IN_CH, HID), dtype=jnp.float32) * (1.0 / jnp.sqrt(IN_CH))
    b1 = jnp.zeros((HID,), dtype=jnp.float32)
    w2 = jax.random.normal(k_w2, (HID, HID), dtype=jnp.float32) * (1.0 / jnp.sqrt(HID))
    b2 = jnp.zeros((HID,), dtype=jnp.float32)

    out = link_prediction_gnn(x, edge_index, w1, b1, w2, b2)
    out = jax.block_until_ready(out)
    assert out.shape == (E,)
    assert bool(jnp.all(jnp.isfinite(out)))

    ref = _reference(x, edge_index, w1, b1, w2, b2)
    assert bool(jnp.max(jnp.abs(out - ref)) < 5e-2)   # bf16 MXU inputs -> loose tol

    print("KERNEL_OK")
</pallas_src>

<mosaic_0001>
module attributes {stable_mosaic.version = 11 : i64} {
  func.func @_gcn_layer_kernel(%arg0: i32, %arg1: i32, %arg2: memref<256x256xi8, #tpu.memory_space<vmem>>, %arg3: memref<256x128xbf16, #tpu.memory_space<vmem>>, %arg4: memref<256x1xf32, #tpu.memory_space<vmem>>, %arg5: memref<128x128xbf16, #tpu.memory_space<vmem>>, %arg6: memref<1x128xf32, #tpu.memory_space<vmem>>, %arg7: memref<256x128xbf16, #tpu.memory_space<vmem>>, %arg8: memref<256x128xf32, #tpu.memory_space<vmem>>) attributes {dimension_semantics = [#tpu.dimension_semantics<parallel>, #tpu.dimension_semantics<arbitrary>], iteration_bounds = array<i64: 1, 1>, scalar_prefetch = 0 : i64, scratch_operands = 1 : i64, tpu.core_type = #tpu.core_type<tc>, window_params = [{transform_indices = @transform_0, window_bounds = array<i64: 256, 256>}, {transform_indices = @transform_1, window_bounds = array<i64: 256, 128>}, {transform_indices = @transform_2, window_bounds = array<i64: 256, 1>}, {pipeline_mode = #tpu.pipeline_mode<synchronous>, transform_indices = @transform_3, window_bounds = array<i64: 128, 128>}, {pipeline_mode = #tpu.pipeline_mode<synchronous>, transform_indices = @transform_4, window_bounds = array<i64: 1, 128>}, {transform_indices = @transform_5, window_bounds = array<i64: 256, 128>}]} {
    %c0_i32 = arith.constant 0 : i32
    %0 = arith.cmpi eq, %arg1, %c0_i32 : i32
    %1 = arith.extui %0 : i1 to i32
    %c0_i32_0 = arith.constant 0 : i32
    %2 = arith.cmpi ne, %1, %c0_i32_0 : i32
    scf.if %2 {
      %cst_10 = arith.constant 0.000000e+00 : f32
      %13 = vector.broadcast %cst_10 : f32 to vector<256x128xf32>
      %c0_11 = arith.constant 0 : index
      %c0_12 = arith.constant 0 : index
      %14 = vector.load %arg8[%c0_11, %c0_12] : memref<256x128xf32, #tpu.memory_space<vmem>>, vector<256x128xf32>
      tpu.vector_store %arg8[%c0_11, %c0_12], %13 {strides = array<i32>} : memref<256x128xf32, #tpu.memory_space<vmem>>, vector<256x128xf32>,
    } else {
    }
    %c0 = arith.constant 0 : index
    %c0_1 = arith.constant 0 : index
    %3 = vector.load %arg2[%c0, %c0_1] : memref<256x256xi8, #tpu.memory_space<vmem>>, vector<256x256xi8>
    %4 = arith.sitofp %3 : vector<256x256xi8> to vector<256x256xbf16>
    %c0_2 = arith.constant 0 : index
    %c0_3 = arith.constant 0 : index
    %5 = vector.load %arg8[%c0_2, %c0_3] : memref<256x128xf32, #tpu.memory_space<vmem>>, vector<256x128xf32>
    %c0_4 = arith.constant 0 : index
    %c0_5 = arith.constant 0 : index
    %6 = vector.load %arg3[%c0_4, %c0_5] : memref<256x128xbf16, #tpu.memory_space<vmem>>, vector<256x128xbf16>
    %cst = arith.constant dense<0.000000e+00> : vector<256x128xf32>
    %7 = tpu.matmul %4, %6, %cst {dimension_numbers = #tpu.dot_dimension_numbers<[1], [0], [0], [1], [0, 0, 1, 1], [], []>} : vector<256x256xbf16>, vector<256x128xbf16>, vector<256x128xf32> -> vector<256x128xf32>
    %8 = arith.addf %5, %7 : vector<256x128xf32>
    %c0_6 = arith.constant 0 : index
    %c0_7 = arith.constant 0 : index
    %9 = vector.load %arg8[%c0_6, %c0_7] : memref<256x128xf32, #tpu.memory_space<vmem>>, vector<256x128xf32>
    tpu.vector_store %arg8[%c0_6, %c0_7], %8 {strides = array<i32>} : memref<256x128xf32, #tpu.memory_space<vmem>>, vector<256x128xf32>,
    %c0_i32_8 = arith.constant 0 : i32
    %10 = arith.cmpi eq, %arg1, %c0_i32_8 : i32
    %11 = arith.extui %10 : i1 to i32
    %c0_i32_9 = arith.constant 0 : i32
    %12 = arith.cmpi ne, %11, %c0_i32_9 : i32
    scf.if %12 {
      %c0_10 = arith.constant 0 : index
      %c0_11 = arith.constant 0 : index
      %13 = vector.load %arg8[%c0_10, %c0_11] : memref<256x128xf32, #tpu.memory_space<vmem>>, vector<256x128xf32>
      %c0_12 = arith.constant 0 : index
      %c0_13 = arith.constant 0 : index
      %14 = vector.load %arg4[%c0_12, %c0_13] : memref<256x1xf32, #tpu.memory_space<vmem>>, vector<256x1xf32>
      %15 = vector.broadcast %14 : vector<256x1xf32> to vector<256x128xf32>
      %16 = arith.mulf %13, %15 : vector<256x128xf32>
      %17 = arith.truncf %16 : vector<256x128xf32> to vector<256x128xbf16>
      %c0_14 = arith.constant 0 : index
      %c0_15 = arith.constant 0 : index
      %18 = vector.load %arg5[%c0_14, %c0_15] : memref<128x128xbf16, #tpu.memory_space<vmem>>, vector<128x128xbf16>
      %cst_16 = arith.constant dense<0.000000e+00> : vector<256x128xf32>
      %19 = tpu.matmul %17, %18, %cst_16 {dimension_numbers = #tpu.dot_dimension_numbers<[1], [0], [0], [1], [0, 0, 1, 1], [], []>} : vector<256x128xbf16>, vector<128x128xbf16>, vector<256x128xf32> -> vector<256x128xf32>
      %c0_17 = arith.constant 0 : index
      %c0_18 = arith.constant 0 : index
      %20 = vector.load %arg6[%c0_17, %c0_18] : memref<1x128xf32, #tpu.memory_space<vmem>>, vector<1x128xf32>
      %21 = vector.broadcast %20 : vector<1x128xf32> to vector<256x128xf32>
      %22 = arith.addf %19, %21 : vector<256x128xf32>
      %cst_19 = arith.constant 0.000000e+00 : f32
      %23 = vector.broadcast %cst_19 : f32 to vector<256x128xf32>
      %24 = arith.maximumf %22, %23 : vector<256x128xf32>
      %c0_20 = arith.constant 0 : index
      %c0_21 = arith.constant 0 : index
      %25 = vector.load %arg4[%c0_20, %c0_21] : memref<256x1xf32, #tpu.memory_space<vmem>>, vector<256x1xf32>
      %26 = vector.broadcast %25 : vector<256x1xf32> to vector<256x128xf32>
      %27 = arith.mulf %24, %26 : vector<256x128xf32>
      %28 = arith.truncf %27 : vector<256x128xf32> to vector<256x128xbf16>
      %c0_22 = arith.constant 0 : index
      %c0_23 = arith.constant 0 : index
      %29 = vector.load %arg7[%c0_22, %c0_23] : memref<256x128xbf16, #tpu.memory_space<vmem>>, vector<256x128xbf16>
      tpu.vector_store %arg7[%c0_22, %c0_23], %28 {strides = array<i32>} : memref<256x128xbf16, #tpu.memory_space<vmem>>, vector<256x128xbf16>,
    } else {
    }
    return
  }
  func.func @transform_0(%arg0: i32, %arg1: i32) -> (i32, i32) {
    %c0_i32 = arith.constant 0 : i32
    return %arg0, %arg1 : i32, i32
  }
  func.func @transform_1(%arg0: i32, %arg1: i32) -> (i32, i32) {
    %c0_i32 = arith.constant 0 : i32
    %c0_i32_0 = arith.constant 0 : i32
    return %arg1, %c0_i32 : i32, i32
  }
  func.func @transform_2(%arg0: i32, %arg1: i32) -> (i32, i32) {
    %c0_i32 = arith.constant 0 : i32
    %c0_i32_0 = arith.constant 0 : i32
    return %arg0, %c0_i32 : i32, i32
  }
  func.func @transform_3(%arg0: i32, %arg1: i32) -> (i32, i32) {
    %c0_i32 = arith.constant 0 : i32
    %c0_i32_0 = arith.constant 0 : i32
    %c0_i32_1 = arith.constant 0 : i32
    return %c0_i32, %c0_i32_0 : i32, i32
  }
  func.func @transform_4(%arg0: i32, %arg1: i32) -> (i32, i32) {
    %c0_i32 = arith.constant 0 : i32
    %c0_i32_0 = arith.constant 0 : i32
    %c0_i32_1 = arith.constant 0 : i32
    return %c0_i32, %c0_i32_0 : i32, i32
  }
  func.func @transform_5(%arg0: i32, %arg1: i32) -> (i32, i32) {
    %c0_i32 = arith.constant 0 : i32
    %c0_i32_0 = arith.constant 0 : i32
    return %arg0, %c0_i32 : i32, i32
  }
}

</mosaic_0001>

<bundles_post_ra>
// kernel: tpu_custom_call.1
= control target key start
LH: loop header
LB: loop body
LE: loop exit
PB: predicated region body
PF: predicated region fallthrough
CT: control target
= control target key end

     0   :  { %10 = vsyncpa [#allocation4], 0  ;;  %s2002_s0 = inlined_call_operand.vmem [shape: s8[256,256], index: 0, kind: input, shape index: {}]   ;;  %s2003_s1 = inlined_call_operand.vmem [shape: bf16[256,128], index: 1, kind: input, shape index: {}]   ;;  %s2004_s2 = inlined_call_operand.vmem [shape: f32[256,1], index: 2, kind: input, shape index: {}]   ;;  %s2005_s3 = inlined_call_operand.hbm [shape: bf16[128,128], index: 3, kind: input, shape index: {}]   ;;  %s2006_s4 = inlined_call_operand.vmem [shape: f32[1,128], index: 4, kind: input, shape index: {}]   ;;  %s2007_s5 = inlined_call_operand.hbm [shape: bf16[256,128], index: 5, kind: output, shape index: {}]  }
   0x1   :  { %11 = vsyncpa [#allocation5], 0  ;;  %s22_s20 = sshll.u32 %s2005_s3, 4  ;;  %s1530_s21 = smov [#allocation3]   ;;  %s23_s20 = int_to_ptr.hbm [resolvable:$true] %s22_s20 }
   0x2   :  { %s24_s22 = sshll.u32 %s1530_s21, 4  ;;  %s1531_s23 = smov 64   ;;  %s25_s22 = int_to_ptr.vmem [resolvable:$true] %s24_s22 }
   0x3   :  { %s1532_s24 = smov 4  }
   0x4   :  { %30 = dma.hbm_to_vmem [thread:$0]  %s23_s20, 1024, %s25_s22, [#allocation4], %s1531_s23, %s1531_s23, %s1532_s24  }
   0x5   :  { %1526 = dma.done.wait [#allocation4], 1024  }
   0x6   :  { %1527 = vsyncadd [#allocation4], 4294966272  ;;  %v1533_v0 = vmov 0   ;;  %v688_v1 = vld [vmem:[%s2004_s2 + $0x10] sm:$0xff]  ;;  %v686_v2 = vld [vmem:[%s2004_s2] sm:$0xff]  ;;  %s1217_s7 = sshll.u32 %s2007_s5, 4  ;;  %s1218_s7 = int_to_ptr.hbm [resolvable:$true] %s1217_s7 }
   0x7   :  { %1475 = vset.pattern.permute.xlu1 %v1533_v0  ;;  %1474 = vset.pattern.permute.xlu0 %v1533_v0  ;;  %v1333_v3 = vld [vmem:[%s2003_s1 + $0x38] sm:$0xff]  ;;  %v1332_v5 = vld [vmem:[%s2003_s1 + $0x30] sm:$0xff]  ;;  %v687_v8 = vld [vmem:[%s2004_s2 + $0x8] sm:$0xff] }
   0x8   :  { %1476 = vset.pattern.permute.xlu2 %v1533_v0  ;;  %730 = vperm.xlu1 %1475, %v688_v1   ;;  %v1583_v4 = vld [vmem:[%s2003_s1 + $0x78] sm:$0xff]  ;;  %v1592_v6 = vld [vmem:[%s2003_s1 + $0x70] sm:$0xff]  ;;  %v1331_v9 = vld [vmem:[%s2003_s1 + $0x28] sm:$0xff] }
   0x9   :  { %720 = vperm.xlu0 %1474, %v686_v2   ;;  %409 = vmatpush.bf16.msra.mxu0 %v1333_v3  ;;  %v689_v7 = vld [vmem:[%s2004_s2 + $0x18] sm:$0xff]  ;;  %v1607_v10 = vld [vmem:[%s2003_s1 + $0x68] sm:$0xff]  ;;  %v690_v11 = vld [vmem:[%s2004_s2 + $0x20] sm:$0xff] }
   0xa   :  { %1445 = vmatpush.bf16.msra.mxu3 %v1333_v3  ;;  %498 = vmatpush.bf16.msra.mxu1 %v1583_v4  ;;  %v1330_v12 = vld [vmem:[%s2003_s1 + $0x20] sm:$0xff]  ;;  %v691_v14 = vld [vmem:[%s2004_s2 + $0x28] sm:$0xff]  ;;  %v693_v15 = vld [vmem:[%s2004_s2 + $0x38] sm:$0xff] }
   0xb   :  { %740 = vperm.xlu2 %1476, %v690_v11   ;;  %v1619_v13 = vld [vmem:[%s2003_s1 + $0x60] sm:$0xff]  ;;  %v692_v16 = vld [vmem:[%s2004_s2 + $0x30] sm:$0xff]  ;;  %v1329_v17 = vld [vmem:[%s2003_s1 + $0x18] sm:$0xff] }
   0xc   :  { %v1637_v18 = vld [vmem:[%s2003_s1 + $0x58] sm:$0xff]  ;;  %v1328_v19 = vld [vmem:[%s2003_s1 + $0x10] sm:$0xff]  ;;  %v73_v21 = vld [vmem:[%s2002_s0] sm:$0xff] }
   0xd   :  { %410 = vmatpush.bf16.msra.mxu0 %v1332_v5  ;;  %v1646_v20 = vld [vmem:[%s2003_s1 + $0x50] sm:$0xff]  ;;  %v1654_v22 = vld [vmem:[%s2002_s0 + $0x60] sm:$0xff]  ;;  %v1659_v23 = vld [vmem:[%s2002_s0 + $0x8] sm:$0xff]  ;;  %v89_v28 = vunpack.c.0.s8 %v73_v21  ;;  %v91_v29 = vunpack.c.1.s8 %v73_v21  ;;  %v93_v52 = vunpack.c.2.s8 %v73_v21  ;;  %v95_v53 = vunpack.c.3.s8 %v73_v21 }
   0xe   :  { %1446 = vmatpush.bf16.msra.mxu3 %v1332_v5  ;;  %499 = vmatpush.bf16.msra.mxu1 %v1592_v6  ;;  %v694_v24 = vld [vmem:[%s2004_s2 + $0x40] sm:$0xff]  ;;  %v696_v25 = vld [vmem:[%s2004_s2 + $0x50] sm:$0xff]  ;;  %v695_v26 = vld [vmem:[%s2004_s2 + $0x48] sm:$0xff]  ;;  %v137_v30 = vunpack.c.0.s8 %v1654_v22  ;;  %v139_v31 = vunpack.c.1.s8 %v1654_v22  ;;  %v90_v33 = vunpack.c.0.s8 %v1659_v23  ;;  %v92_v34 = vunpack.c.1.s8 %v1659_v23 }
   0xf   :  { %v1327_v27 = vld [vmem:[%s2003_s1 + $0x8] sm:$0xff]  ;;  %v1326_v35 = vld [vmem:[%s2003_s1] sm:$0xff]  ;;  %v153_v36 = vcvt.s32.f32 %v89_v28  ;;  %v155_v37 = vcvt.s32.f32 %v91_v29  ;;  %v697_v43 = vld [vmem:[%s2004_s2 + $0x58] sm:$0xff]  ;;  %v141_v54 = vunpack.c.2.s8 %v1654_v22  ;;  %v143_v55 = vunpack.c.3.s8 %v1654_v22 }
  0x10   :  { %735 = vperm.xlu1 %1475, %v689_v7   ;;  %v1679_v32 = vld [vmem:[%s2003_s1 + $0x48] sm:$0xff]  ;;  %v201_v38 = vcvt.s32.f32 %v137_v30  ;;  %v203_v39 = vcvt.s32.f32 %v139_v31  ;;  %v1690_v40 = vld [vmem:[%s2003_s1 + $0x40] sm:$0xff]  ;;  %v154_v41 = vcvt.s32.f32 %v90_v33  ;;  %v156_v42 = vcvt.s32.f32 %v92_v34  ;;  %v700_v49 = vld [vmem:[%s2004_s2 + $0x70] sm:$0xff] }
  0x11   :  { %725 = vperm.xlu0 %1474, %v687_v8   ;;  %411 = vmatpush.bf16.msra.mxu0 %v1331_v9  ;;  %v699_v44 = vld [vmem:[%s2004_s2 + $0x68] sm:$0xff]  ;;  %v698_v45 = vld [vmem:[%s2004_s2 + $0x60] sm:$0xff]  ;;  %v217_v46 = vpack.c.bf16 %v155_v37, %v153_v36  ;;  %v701_v51 = vld [vmem:[%s2004_s2 + $0x78] sm:$0xff]  ;;  %v94_v56 = vunpack.c.2.s8 %v1659_v23  ;;  %v96_v57 = vunpack.c.3.s8 %v1659_v23  ;;  %v157_v58 = vcvt.s32.f32 %v93_v52 }
  0x12   :  { %1447 = vmatpush.bf16.msra.mxu3 %v1331_v9  ;;  %500 = vmatpush.bf16.msra.mxu1 %v1607_v10  ;;  %v241_v47 = vpack.c.bf16 %v203_v39, %v201_v38  ;;  %v218_v48 = vpack.c.bf16 %v156_v42, %v154_v41  ;;  %v702_v50 = vld [vmem:[%s2004_s2 + $0x80] sm:$0xff]  ;;  %v159_v59 = vcvt.s32.f32 %v95_v53  ;;  %v205_v60 = vcvt.s32.f32 %v141_v54  ;;  %v703_v0 = vld [vmem:[%s2004_s2 + $0x88] sm:$0xff]  ;;  %v87_v7 = vld [vmem:[%s2002_s0 + $0x70] sm:$0xff] }
  0x13   :  { %745 = vperm.xlu2 %1476, %v691_v14   ;;  %v207_v61 = vcvt.s32.f32 %v143_v55  ;;  %v158_v62 = vcvt.s32.f32 %v94_v56  ;;  %v160_v63 = vcvt.s32.f32 %v96_v57  ;;  %v711_v1 = vld [vmem:[%s2004_s2 + $0xc8] sm:$0xff]  ;;  %v710_v2 = vld [vmem:[%s2004_s2 + $0xc0] sm:$0xff]  ;;  %v76_v8 = vld [vmem:[%s2002_s0 + $0x18] sm:$0xff]  ;;  %v145_v14 = vunpack.c.0.s8 %v87_v7 }
  0x14   :  { %v219_v3 = vpack.c.bf16 %v159_v59, %v157_v58  ;;  %v704_v9 = vld [vmem:[%s2004_s2 + $0x90] sm:$0xff]  ;;  %v705_v11 = vld [vmem:[%s2004_s2 + $0x98] sm:$0xff]  ;;  %v714_v30 = vld [vmem:[%s2004_s2 + $0xe0] sm:$0xff]  ;;  %v151_v36 = vunpack.c.3.s8 %v87_v7  ;;  %v102_v37 = vunpack.c.2.s8 %v76_v8  ;;  %v104_v38 = vunpack.c.3.s8 %v76_v8 }
  0x15   :  { %412 = vmatpush.bf16.msra.mxu0 %v1330_v12  ;;  %v220_v5 = vpack.c.bf16 %v160_v63, %v158_v62  ;;  %v708_v31 = vld [vmem:[%s2004_s2 + $0xb0] sm:$0xff]  ;;  %v86_v52 = vld [vmem:[%s2002_s0 + $0x68] sm:$0xff] }
  0x16   :  { %1448 = vmatpush.bf16.msra.mxu3 %v1330_v12  ;;  %501 = vmatpush.bf16.msra.mxu1 %v1619_v13  ;;  %v215_v42 = vcvt.s32.f32 %v151_v36  ;;  %v78_v53 = vld [vmem:[%s2002_s0 + $0x28] sm:$0xff]  ;;  %v138_v56 = vunpack.c.0.s8 %v86_v52  ;;  %v140_v57 = vunpack.c.1.s8 %v86_v52 }
  0x17   :  { %v106_v58 = vunpack.c.0.s8 %v78_v53  ;;  %v108_v59 = vunpack.c.1.s8 %v78_v53 }
  0x18   :  { %755 = vperm.xlu1 %1475, %v693_v15   ;;  %v147_v15 = vunpack.c.1.s8 %v87_v7  ;;  %v202_v62 = vcvt.s32.f32 %v138_v56  ;;  %v204_v63 = vcvt.s32.f32 %v140_v57 }
  0x19   :  { %750 = vperm.xlu0 %1474, %v692_v16   ;;  %413 = vmatpush.bf16.msra.mxu0 %v1329_v17  ;;  %v98_v16 = vunpack.c.0.s8 %v76_v8 }
  0x1a   :  { %1449 = vmatpush.bf16.msra.mxu3 %v1329_v17  ;;  %502 = vmatpush.bf16.msra.mxu1 %v1637_v18  ;;  %v100_v17 = vunpack.c.1.s8 %v76_v8  ;;  %v211_v21 = vcvt.s32.f32 %v147_v15  ;;  %v144_v8 = vunpack.c.3.s8 %v86_v52 }
  0x1b   :  { %760 = vperm.xlu2 %1476, %v694_v24   ;;  %v162_v22 = vcvt.s32.f32 %v98_v16  ;;  %v713_v24 = vld [vmem:[%s2004_s2 + $0xd8] sm:$0xff] }
  0x1c   :  { %v164_v23 = vcvt.s32.f32 %v100_v17  ;;  %v1349_v17 = vld [vmem:[#allocation3 + $0x38] sm:$0xff] }
  0x1d   :  { %414 = vmatpush.bf16.msra.mxu0 %v1328_v19  ;;  %994 = vmatpush.bf16.msra.mxu2 %v1349_v17 }
  0x1e   :  { %1450 = vmatpush.bf16.msra.mxu3 %v1328_v19  ;;  %503 = vmatpush.bf16.msra.mxu1 %v1646_v20  ;;  %v222_v29 = vpack.c.bf16 %v164_v23, %v162_v22  ;;  %v79_v22 = vld [vmem:[%s2002_s0 + $0x30] sm:$0xff]  ;;  %v88_v23 = vld [vmem:[%s2002_s0 + $0x78] sm:$0xff] }
  0x20   :  { %770 = vperm.xlu1 %1475, %v696_v25   ;;  %v707_v25 = vld [vmem:[%s2004_s2 + $0xa8] sm:$0xff] }
  0x21   :  { %765 = vperm.xlu0 %1474, %v695_v26   ;;  %415 = vmatpush.bf16.msra.mxu0 %v1327_v27  ;;  %v706_v26 = vld [vmem:[%s2004_s2 + $0xa0] sm:$0xff] }
  0x22   :  { %1451 = vmatpush.bf16.msra.mxu3 %v1327_v27  ;;  %504 = vmatpush.bf16.msra.mxu1 %v1679_v32 }
  0x23   :  { %775 = vperm.xlu2 %1476, %v697_v43   ;;  %v166_v43 = vcvt.s32.f32 %v102_v37 }
  0x25   :  { %416 = vmatpush.bf16.msra.mxu0 %v1326_v35 }
  0x26   :  { %1452 = vmatpush.bf16.msra.mxu3 %v1326_v35  ;;  %505 = vmatpush.bf16.msra.mxu1 %v1690_v40  ;;  %v149_v35 = vunpack.c.2.s8 %v87_v7  ;;  %v142_v7 = vunpack.c.2.s8 %v86_v52 }
  0x28   :  { %785 = vperm.xlu1 %1475, %v699_v44   ;;  %417 = vmatmul.bf16.vlgmr.msra.gmra.mxu0 %v217_v46  ;;  %v213_v41 = vcvt.s32.f32 %v149_v35  ;;  %v168_v44 = vcvt.s32.f32 %v104_v38  ;;  %v717_v46 = vld [vmem:[%s2004_s2 + $0xf8] sm:$0xff] }
  0x29   :  { %780 = vperm.xlu0 %1474, %v698_v45   ;;  %477 = vmatmul.bf16.vlgmr.msra.gmra.mxu3 %v241_v47  ;;  %v709_v45 = vld [vmem:[%s2004_s2 + $0xb8] sm:$0xff]  ;;  %v716_v47 = vld [vmem:[%s2004_s2 + $0xf0] sm:$0xff] }
  0x2a   :  { %1453 = vmatpush.bf16.msrb.mxu3 %v1583_v4  ;;  %506 = vmatmul.bf16.vlgmr.msra.gmra.mxu1 %v218_v48  ;;  %v243_v4 = vpack.c.bf16 %v207_v61, %v205_v60 }
  0x2b   :  { %790 = vperm.xlu2 %1476, %v700_v49   ;;  %v247_v49 = vpack.c.bf16 %v215_v42, %v213_v41  ;;  %v1345_v41 = vld [vmem:[#allocation3 + $0x18] sm:$0xff] }
  0x2e   :  { %1454 = vmatpush.bf16.msrb.mxu3 %v1592_v6  ;;  %v75_v6 = vld [vmem:[%s2002_s0 + $0x10] sm:$0xff] }
  0x2f   :  { %v97_v12 = vunpack.c.0.s8 %v75_v6  ;;  %v101_v33 = vunpack.c.2.s8 %v75_v6  ;;  %v103_v34 = vunpack.c.3.s8 %v75_v6 }
  0x30   :  { %800 = vperm.xlu1 %1475, %v702_v50   ;;  %v224_v50 = vpack.c.bf16 %v168_v44, %v166_v43  ;;  %v1344_v43 = vld [vmem:[#allocation3 + $0x10] sm:$0xff]  ;;  %v117_v44 = vunpack.c.2.s8 %v79_v22 }
  0x31   :  { %795 = vperm.xlu0 %1474, %v701_v51   ;;  %v165_v39 = vcvt.s32.f32 %v101_v33  ;;  %v77_v51 = vld [vmem:[%s2002_s0 + $0x20] sm:$0xff] }
  0x32   :  { %1455 = vmatpush.bf16.msrb.mxu3 %v1607_v10  ;;  %v712_v10 = vld [vmem:[%s2004_s2 + $0xd0] sm:$0xff]  ;;  %v105_v54 = vunpack.c.0.s8 %v77_v51  ;;  %v107_v55 = vunpack.c.1.s8 %v77_v51 }
  0x33   :  { %805 = vperm.xlu2 %1476, %v703_v0   ;;  %v170_v0 = vcvt.s32.f32 %v106_v58 }
  0x34   :  { %v169_v60 = vcvt.s32.f32 %v105_v54  ;;  %v171_v61 = vcvt.s32.f32 %v107_v55  ;;  %v1342_v55 = vld [vmem:[#allocation3] sm:$0xff] }
  0x36   :  { %1456 = vmatpush.bf16.msrb.mxu3 %v1619_v13  ;;  %v99_v13 = vunpack.c.1.s8 %v75_v6  ;;  %v111_v6 = vunpack.c.3.s8 %v77_v51 }
  0x38   :  { %845 = vperm.xlu1 %1475, %v711_v1   ;;  %422 = vmatmul.bf16.gmra.mxu0 %v219_v3  ;;  %v163_v19 = vcvt.s32.f32 %v99_v13  ;;  %v172_v1 = vcvt.s32.f32 %v108_v59  ;;  %v242_v3 = vpack.c.bf16 %v204_v63, %v202_v62  ;;  %v206_v13 = vcvt.s32.f32 %v142_v7  ;;  %v82_v62 = vld [vmem:[%s2002_s0 + $0x48] sm:$0xff] }
  0x39   :  { %840 = vperm.xlu0 %1474, %v710_v2   ;;  %482 = vmatmul.bf16.gmra.mxu3 %v243_v4  ;;  %v225_v2 = vpack.c.bf16 %v171_v61, %v169_v60  ;;  %v81_v61 = vld [vmem:[%s2002_s0 + $0x40] sm:$0xff] }
  0x3a   :  { %1457 = vmatpush.bf16.msrb.mxu3 %v1637_v18  ;;  %511 = vmatmul.bf16.gmra.mxu1 %v220_v5  ;;  %v161_v18 = vcvt.s32.f32 %v97_v12  ;;  %v226_v4 = vpack.c.bf16 %v172_v1, %v170_v0  ;;  %v109_v5 = vunpack.c.2.s8 %v77_v51  ;;  %v175_v12 = vcvt.s32.f32 %v111_v6 }
  0x3b   :  { %810 = vperm.xlu2 %1476, %v704_v9   ;;  %v110_v9 = vunpack.c.2.s8 %v78_v53  ;;  %v181_v51 = vcvt.s32.f32 %v117_v44  ;;  %v121_v63 = vunpack.c.0.s8 %v81_v61  ;;  %v123_v0 = vunpack.c.1.s8 %v81_v61 }
  0x3c   :  { %v221_v27 = vpack.c.bf16 %v163_v19, %v161_v18  ;;  %v122_v1 = vunpack.c.0.s8 %v82_v62 }
  0x3d   :  { %v174_v15 = vcvt.s32.f32 %v110_v9 }
  0x3e   :  { %1458 = vmatpush.bf16.msrb.mxu3 %v1646_v20  ;;  %v209_v20 = vcvt.s32.f32 %v145_v14  ;;  %v208_v14 = vcvt.s32.f32 %v144_v8 }
  0x40   :  { %850 = vperm.xlu1 %1475, %v712_v10   ;;  %v245_v28 = vpack.c.bf16 %v211_v21, %v209_v20  ;;  %v112_v10 = vunpack.c.3.s8 %v78_v53  ;;  %v244_v19 = vpack.c.bf16 %v208_v14, %v206_v13  ;;  %v1348_v21 = vld [vmem:[#allocation3 + $0x30] sm:$0xff]  ;;  %v125_v13 = vunpack.c.2.s8 %v81_v61 }
  0x41   :  { %815 = vperm.xlu0 %1474, %v705_v11   ;;  %v173_v11 = vcvt.s32.f32 %v109_v5  ;;  %995 = vmatpush.bf16.msra.mxu2 %v1348_v21  ;;  %v186_v5 = vcvt.s32.f32 %v122_v1  ;;  %v127_v14 = vunpack.c.3.s8 %v81_v61 }
  0x42   :  { %1459 = vmatpush.bf16.msrb.mxu3 %v1679_v32  ;;  %v715_v32 = vld [vmem:[%s2004_s2 + $0xe8] sm:$0xff]  ;;  %v176_v16 = vcvt.s32.f32 %v112_v10 }
  0x43   :  { %855 = vperm.xlu2 %1476, %v713_v24   ;;  %v227_v18 = vpack.c.bf16 %v175_v12, %v173_v11  ;;  %v80_v24 = vld [vmem:[%s2002_s0 + $0x38] sm:$0xff] }
  0x44   :  { %v228_v20 = vpack.c.bf16 %v176_v16, %v174_v15 }
  0x46   :  { %1460 = vmatpush.bf16.msrb.mxu3 %v1690_v40  ;;  %v167_v40 = vcvt.s32.f32 %v103_v34 }
  0x48   :  { %825 = vperm.xlu1 %1475, %v707_v25   ;;  %427 = vmatmul.bf16.gmra.mxu0 %v221_v27  ;;  %v223_v48 = vpack.c.bf16 %v167_v40, %v165_v39  ;;  %v1347_v25 = vld [vmem:[#allocation3 + $0x28] sm:$0xff]  ;;  %v115_v27 = vunpack.c.1.s8 %v79_v22 }
  0x49   :  { %820 = vperm.xlu0 %1474, %v706_v26   ;;  %487 = vmatmul.bf16.gmra.mxu3 %v245_v28  ;;  %v113_v26 = vunpack.c.0.s8 %v79_v22  ;;  %v146_v28 = vunpack.c.0.s8 %v88_v23 }
  0x4a   :  { %516 = vmatmul.bf16.gmra.mxu1 %v222_v29  ;;  %1461 = vmatpush.bf16.msra.mxu3 %v1349_v17  ;;  %v148_v29 = vunpack.c.1.s8 %v88_v23  ;;  %v179_v34 = vcvt.s32.f32 %v115_v27  ;;  %v126_v17 = vunpack.c.2.s8 %v82_v62 }
  0x4b   :  { %860 = vperm.xlu2 %1476, %v714_v30   ;;  %v114_v30 = vunpack.c.0.s8 %v80_v24  ;;  %996 = vmatpush.bf16.msra.mxu2 %v1347_v25  ;;  %v177_v33 = vcvt.s32.f32 %v113_v26  ;;  %v210_v35 = vcvt.s32.f32 %v146_v28 }
  0x4c   :  { %v212_v36 = vcvt.s32.f32 %v148_v29  ;;  %v190_v26 = vcvt.s32.f32 %v126_v17 }
  0x4d   :  { %v178_v37 = vcvt.s32.f32 %v114_v30  ;;  %v229_v39 = vpack.c.bf16 %v179_v34, %v177_v33 }
  0x4e   :  { %1462 = vmatpush.bf16.msra.mxu3 %v1348_v21  ;;  %v246_v40 = vpack.c.bf16 %v212_v36, %v210_v35  ;;  %v83_v35 = vld [vmem:[%s2002_s0 + $0x50] sm:$0xff]  ;;  %v84_v36 = vld [vmem:[%s2002_s0 + $0x58] sm:$0xff] }
  0x50   :  { %830 = vperm.xlu1 %1475, %v708_v31   ;;  %v116_v31 = vunpack.c.1.s8 %v80_v24 }
  0x51   :  { %865 = vperm.xlu0 %1474, %v715_v32   ;;  %v1346_v32 = vld [vmem:[#allocation3 + $0x20] sm:$0xff] }
  0x52   :  { %1463 = vmatpush.bf16.msra.mxu3 %v1347_v25  ;;  %v180_v38 = vcvt.s32.f32 %v116_v31  ;;  %997 = vmatpush.bf16.msra.mxu2 %v1346_v32 }
  0x53   :  { %835 = vperm.xlu2 %1476, %v709_v45   ;;  %v119_v45 = vunpack.c.3.s8 %v79_v22  ;;  %v189_v22 = vcvt.s32.f32 %v125_v13 }
  0x54   :  { %v230_v42 = vpack.c.bf16 %v180_v38, %v178_v37  ;;  %v129_v38 = vunpack.c.0.s8 %v83_v35 }
  0x55   :  { %v183_v52 = vcvt.s32.f32 %v119_v45 }
  0x56   :  { %1464 = vmatpush.bf16.msra.mxu3 %v1346_v32  ;;  %998 = vmatpush.bf16.msra.mxu2 %v1345_v41 }
  0x57   :  { %v231_v58 = vpack.c.bf16 %v183_v52, %v181_v51 }
  0x58   :  { %875 = vperm.xlu1 %1475, %v717_v46   ;;  %432 = vmatmul.bf16.gmra.mxu0 %v223_v48  ;;  %v150_v46 = vunpack.c.2.s8 %v88_v23  ;;  %v1343_v48 = vld [vmem:[#allocation3 + $0x8] sm:$0xff] }
  0x59   :  { %870 = vperm.xlu0 %1474, %v716_v47   ;;  %492 = vmatmul.bf16.gmra.mxu3 %v247_v49  ;;  %v152_v47 = vunpack.c.3.s8 %v88_v23  ;;  %v118_v49 = vunpack.c.2.s8 %v80_v24  ;;  %v191_v23 = vcvt.s32.f32 %v127_v14 }
  0x5a   :  { %521 = vmatmul.bf16.gmra.mxu1 %v224_v50  ;;  %1465 = vmatpush.bf16.msra.mxu3 %v1345_v41  ;;  %v120_v50 = vunpack.c.3.s8 %v80_v24  ;;  %v214_v53 = vcvt.s32.f32 %v150_v46 }
  0x5b   :  { %999 = vmatpush.bf16.msra.mxu2 %v1344_v43  ;;  %v216_v54 = vcvt.s32.f32 %v152_v47  ;;  %v182_v56 = vcvt.s32.f32 %v118_v49  ;;  %v235_v30 = vpack.c.bf16 %v191_v23, %v189_v22 }
  0x5c   :  { %v184_v57 = vcvt.s32.f32 %v120_v50 }
  0x5d   :  { %v248_v59 = vpack.c.bf16 %v216_v54, %v214_v53 }
  0x5e   :  { %1466 = vmatpush.bf16.msra.mxu3 %v1344_v43  ;;  %v232_v60 = vpack.c.bf16 %v184_v57, %v182_v56  ;;  %v132_v43 = vunpack.c.1.s8 %v84_v36 }
  0x5f   :  { %1000 = vmatpush.bf16.msra.mxu2 %v1343_v48 }
  0x60   :  { %v196_v53 = vcvt.s32.f32 %v132_v43 }
  0x62   :  { %1467 = vmatpush.bf16.msra.mxu3 %v1343_v48  ;;  %v193_v48 = vcvt.s32.f32 %v129_v38 }
  0x63   :  { %1001 = vmatpush.bf16.msra.mxu2 %v1342_v55 }
  0x65   :  { %v1821_v44 = vpop.permute.xlu2 %740 }
  0x66   :  { %1468 = vmatpush.bf16.msra.mxu3 %v1342_v55 }
  0x68   :  { %437 = vmatmul.bf16.gmra.mxu0 %v225_v2  ;;  %v124_v2 = vunpack.c.1.s8 %v82_v62 }
  0x69   :  { %566 = vmatmul.bf16.vlgmr.msrb.gmra.mxu3 %v242_v3  ;;  %v185_v3 = vcvt.s32.f32 %v121_v63  ;;  %v133_v63 = vunpack.c.2.s8 %v83_v35 }
  0x6a   :  { %526 = vmatmul.bf16.gmra.mxu1 %v226_v4  ;;  %v187_v4 = vcvt.s32.f32 %v123_v0  ;;  %v188_v6 = vcvt.s32.f32 %v124_v2  ;;  %v135_v0 = vunpack.c.3.s8 %v83_v35 }
  0x6c   :  { %v233_v7 = vpack.c.bf16 %v187_v4, %v185_v3  ;;  %v234_v9 = vpack.c.bf16 %v188_v6, %v186_v5  ;;  %v134_v4 = vunpack.c.2.s8 %v84_v36  ;;  %v136_v5 = vunpack.c.3.s8 %v84_v36 }
  0x6e   :  { %v198_v14 = vcvt.s32.f32 %v134_v4 }
  0x78   :  { %442 = vmatmul.bf16.gmra.mxu0 %v227_v18  ;;  %v128_v18 = vunpack.c.3.s8 %v82_v62 }
  0x79   :  { %571 = vmatmul.bf16.gmra.mxu3 %v244_v19 }
  0x7a   :  { %531 = vmatmul.bf16.gmra.mxu1 %v228_v20  ;;  %v192_v27 = vcvt.s32.f32 %v128_v18  ;;  %v1811_v33 = vpop.permute.xlu1 %730 }
  0x7b   :  { %v1801_v10 = vpop.permute.xlu0 %720 }
  0x7c   :  { %v236_v32 = vpack.c.bf16 %v192_v27, %v190_v26 }
  0x82   :  { %v1823_v47 = vpop.permute.xlu1 %735 }
  0x83   :  { %v1805_v21 = vpop.permute.xlu0 %725 }
  0x88   :  { %447 = vmatmul.bf16.gmra.mxu0 %v229_v39  ;;  %v131_v39 = vunpack.c.1.s8 %v83_v35 }
  0x89   :  { %576 = vmatmul.bf16.gmra.mxu3 %v246_v40 }
  0x8a   :  { %536 = vmatmul.bf16.gmra.mxu1 %v230_v42  ;;  %v130_v42 = vunpack.c.0.s8 %v84_v36  ;;  %v195_v49 = vcvt.s32.f32 %v131_v39  ;;  %v1833_v62 = vpop.permute.xlu1 %755 }
  0x8b   :  { %v1835_v1 = vpop.permute.xlu0 %750 }
  0x8c   :  { %v194_v52 = vcvt.s32.f32 %v130_v42  ;;  %v237_v56 = vpack.c.bf16 %v195_v49, %v193_v48 }
  0x92   :  { %v1843_v23 = vpop.permute.xlu1 %770 }
  0x98   :  { %452 = vmatmul.bf16.gmra.mxu0 %v231_v58  ;;  %v238_v58 = vpack.c.bf16 %v196_v53, %v194_v52 }
  0x99   :  { %581 = vmatmul.bf16.gmra.mxu3 %v248_v59 }
  0x9a   :  { %541 = vmatmul.bf16.gmra.mxu1 %v232_v60  ;;  %v1829_v60 = vpop.permute.xlu2 %745 }
  0xa5   :  { %v418_v8 = vpop.f32.mrf.mxu0 }
  0xa7   :  { %v507_v11 = vpop.f32.mrf.mxu1 }
  0xa8   :  { %457 = vmatmul.bf16.gmra.mxu0 %v233_v7  ;;  %v508_v15 = vadd.f32 %v507_v11, %v418_v8  ;;  %v197_v8 = vcvt.s32.f32 %v133_v63 }
  0xaa   :  { %546 = vmatmul.bf16.gmra.mxu1 %v234_v9  ;;  %v878_v24 = vmul.f32 %v1801_v10, %v508_v15  ;;  %v199_v9 = vcvt.s32.f32 %v135_v0  ;;  %v200_v15 = vcvt.s32.f32 %v136_v5 }
  0xac   :  { %v1803_v12 = vpop.f32.mrf.mxu3  ;;  %v240_v22 = vpack.c.bf16 %v200_v15, %v198_v14 }
  0xad   :  { %v420_v16 = vpop.f32.mrf.mxu0 }
  0xaf   :  { %v509_v19 = vpop.f32.mrf.mxu1 }
  0xb0   :  { %v510_v20 = vadd.f32 %v509_v19, %v420_v16  ;;  %v1839_v16 = vpop.permute.xlu2 %760  ;;  %v239_v19 = vpack.c.bf16 %v199_v9, %v197_v8 }
  0xb2   :  { %v879_v25 = vmul.f32 %v1805_v21, %v510_v20 }
  0xb4   :  { %v1809_v28 = vpop.f32.mrf.mxu3  ;;  %v910_v29 = vpack.c.bf16 %v879_v25, %v878_v24  ;;  %v1845_v25 = vpop.permute.xlu0 %765 }
  0xb5   :  { %v423_v31 = vpop.f32.mrf.mxu0 }
  0xb6   :  { %1002 = vmatmul.bf16.vlgmr.msra.gmra.mxu2 %v910_v29 }
  0xb7   :  { %v512_v34 = vpop.f32.mrf.mxu1 }
  0xb8   :  { %462 = vmatmul.bf16.gmra.mxu0 %v235_v30  ;;  %v513_v40 = vadd.f32 %v512_v34, %v423_v31  ;;  %v1849_v27 = vpop.permute.xlu2 %775  ;;  %v1851_v34 = vpop.permute.xlu1 %785 }
  0xba   :  { %551 = vmatmul.bf16.gmra.mxu1 %v236_v32  ;;  %v880_v50 = vmul.f32 %v1811_v33, %v513_v40 }
  0xbc   :  { %v1819_v37 = vpop.f32.mrf.mxu3  ;;  %v1853_v35 = vpop.permute.xlu0 %780 }
  0xbd   :  { %v425_v41 = vpop.f32.mrf.mxu0 }
  0xbf   :  { %v514_v45 = vpop.f32.mrf.mxu1 }
  0xc0   :  { %v515_v46 = vadd.f32 %v514_v45, %v425_v41  ;;  %v1859_v42 = vpop.permute.xlu2 %790  ;;  %v1861_v45 = vpop.permute.xlu1 %800 }
  0xc2   :  { %v881_v51 = vmul.f32 %v1823_v47, %v515_v46 }
  0xc4   :  { %v1827_v54 = vpop.f32.mrf.mxu3  ;;  %v911_v55 = vpack.c.bf16 %v881_v51, %v880_v50  ;;  %v1863_v46 = vpop.permute.xlu0 %795 }
  0xc5   :  { %v428_v57 = vpop.f32.mrf.mxu0 }
  0xc6   :  { %1007 = vmatmul.bf16.gmra.mxu2 %v911_v55 }
  0xc7   :  { %v517_v59 = vpop.f32.mrf.mxu1 }
  0xc8   :  { %467 = vmatmul.bf16.gmra.mxu0 %v237_v56  ;;  %v518_v2 = vadd.f32 %v517_v59, %v428_v57  ;;  %v1865_v53 = vpop.permute.xlu2 %805  ;;  %v1870_v63 = vpop.permute.xlu1 %845 }
  0xca   :  { %556 = vmatmul.bf16.gmra.mxu1 %v238_v58  ;;  %v882_v11 = vmul.f32 %v1821_v44, %v518_v2 }
  0xcc   :  { %v1831_v61 = vpop.f32.mrf.mxu3  ;;  %v1873_v2 = vpop.permute.xlu0 %840 }
  0xcd   :  { %v430_v3 = vpop.f32.mrf.mxu0 }
  0xcf   :  { %v519_v6 = vpop.f32.mrf.mxu1 }
  0xd0   :  { %v520_v7 = vadd.f32 %v519_v6, %v430_v3  ;;  %v1877_v8 = vpop.permute.xlu2 %810 }
  0xd2   :  { %v883_v13 = vmul.f32 %v1829_v60, %v520_v7 }
  0xd4   :  { %v1841_v17 = vpop.f32.mrf.mxu3  ;;  %v912_v18 = vpack.c.bf16 %v883_v13, %v882_v11  ;;  %v1879_v15 = vpop.permute.xlu0 %815 }
  0xd5   :  { %v433_v20 = vpop.f32.mrf.mxu0 }
  0xd6   :  { %1012 = vmatmul.bf16.gmra.mxu2 %v912_v18 }
  0xd7   :  { %v522_v24 = vpop.f32.mrf.mxu1 }
  0xd8   :  { %472 = vmatmul.bf16.gmra.mxu0 %v239_v19  ;;  %v523_v29 = vadd.f32 %v522_v24, %v433_v20  ;;  %v1884_v24 = vpop.permute.xlu2 %855 }
  0xda   :  { %561 = vmatmul.bf16.gmra.mxu1 %v240_v22  ;;  %v884_v36 = vmul.f32 %v1835_v1, %v523_v29 }
  0xdc   :  { %v1847_v26 = vpop.f32.mrf.mxu3 }
  0xdd   :  { %v435_v30 = vpop.f32.mrf.mxu0 }
  0xdf   :  { %v524_v31 = vpop.f32.mrf.mxu1 }
  0xe0   :  { %v525_v32 = vadd.f32 %v524_v31, %v435_v30  ;;  %v1887_v30 = vpop.permute.xlu1 %850 }
  0xe2   :  { %v885_v38 = vmul.f32 %v1833_v62, %v525_v32 }
  0xe4   :  { %v1857_v39 = vpop.f32.mrf.mxu3  ;;  %v913_v40 = vpack.c.bf16 %v885_v38, %v884_v36 }
  0xe5   :  { %v438_v41 = vpop.f32.mrf.mxu0 }
  0xe6   :  { %1017 = vmatmul.bf16.gmra.mxu2 %v913_v40 }
  0xe7   :  { %v527_v43 = vpop.f32.mrf.mxu1 }
  0xe8   :  { %v528_v49 = vadd.f32 %v527_v43, %v438_v41  ;;  %v1891_v41 = vpop.permute.xlu0 %820 }
  0xea   :  { %v886_v55 = vmul.f32 %v1839_v16, %v528_v49 }
  0xec   :  { %v567_v48 = vpop.f32.mrf.mxu3 }
  0xed   :  { %v440_v50 = vpop.f32.mrf.mxu0  ;;  %v568_v57 = vadd.f32 %v567_v48, %v1803_v12 }
  0xef   :  { %v529_v51 = vpop.f32.mrf.mxu1  ;;  %v902_v4 = vmul.f32 %v1873_v2, %v568_v57 }
  0xf0   :  { %v530_v52 = vadd.f32 %v529_v51, %v440_v50  ;;  %v1893_v51 = vpop.permute.xlu1 %825 }
  0xf2   :  { %v887_v56 = vmul.f32 %v1845_v25, %v530_v52 }
  0xf4   :  { %v569_v58 = vpop.f32.mrf.mxu3  ;;  %v914_v59 = vpack.c.bf16 %v887_v56, %v886_v55 }
  0xf5   :  { %v570_v0 = vadd.f32 %v569_v58, %v1809_v28  ;;  %v443_v3 = vpop.f32.mrf.mxu0  ;;  %v1898_v58 = vpop.permute.xlu2 %860 }
  0xf6   :  { %1022 = vmatmul.bf16.gmra.mxu2 %v914_v59 }
  0xf7   :  { %v903_v5 = vmul.f32 %v1870_v63, %v570_v0  ;;  %v532_v6 = vpop.f32.mrf.mxu1  ;;  %v1901_v0 = vpop.permute.xlu0 %865 }
  0xf8   :  { %v533_v9 = vadd.f32 %v532_v6, %v443_v3 }
  0xf9   :  { %v922_v7 = vpack.c.bf16 %v903_v5, %v902_v4 }
  0xfa   :  { %v888_v28 = vmul.f32 %v1843_v23, %v533_v9 }
  0xfb   :  { %1062 = vmatmul.bf16.vlgmr.msra.gmra.mxu3 %v922_v7 }
  0xfc   :  { %v572_v12 = vpop.f32.mrf.mxu3 }
  0xfd   :  { %v445_v11 = vpop.f32.mrf.mxu0  ;;  %v573_v19 = vadd.f32 %v572_v12, %v1819_v37  ;;  %v1905_v12 = vpop.permute.xlu1 %830 }
  0xff   :  { %v534_v13 = vpop.f32.mrf.mxu1  ;;  %v904_v32 = vmul.f32 %v1887_v30, %v573_v19 }
 0x100   :  { %v535_v14 = vadd.f32 %v534_v13, %v445_v11 }
 0x102   :  { %v889_v18 = vmul.f32 %v1849_v27, %v535_v14 }
 0x104   :  { %v574_v20 = vpop.f32.mrf.mxu3  ;;  %v915_v22 = vpack.c.bf16 %v889_v18, %v888_v28 }
 0x105   :  { %v575_v29 = vadd.f32 %v574_v20, %v1827_v54  ;;  %v448_v31 = vpop.f32.mrf.mxu0 }
 0x106   :  { %1027 = vmatmul.bf16.gmra.mxu2 %v915_v22  ;;  %v1910_v22 = vpop.permute.xlu1 %875 }
 0x107   :  { %v905_v36 = vmul.f32 %v1884_v24, %v575_v29  ;;  %v537_v38 = vpop.f32.mrf.mxu1 }
 0x108   :  { %v538_v43 = vadd.f32 %v537_v38, %v448_v31  ;;  %v1913_v31 = vpop.permute.xlu0 %870 }
 0x109   :  { %v923_v40 = vpack.c.bf16 %v905_v36, %v904_v32 }
 0x10a   :  { %v890_v54 = vmul.f32 %v1853_v35, %v538_v43 }
 0x10b   :  { %1067 = vmatmul.bf16.gmra.mxu3 %v923_v40 }
 0x10c   :  { %v577_v37 = vpop.f32.mrf.mxu3 }
 0x10d   :  { %v450_v48 = vpop.f32.mrf.mxu0  ;;  %v578_v55 = vadd.f32 %v577_v37, %v1831_v61 }
 0x10f   :  { %v539_v49 = vpop.f32.mrf.mxu1  ;;  %v906_v4 = vmul.f32 %v1898_v58, %v578_v55 }
 0x110   :  { %v540_v50 = vadd.f32 %v539_v49, %v450_v48 }
 0x112   :  { %v891_v52 = vmul.f32 %v1851_v34, %v540_v50 }
 0x114   :  { %v579_v56 = vpop.f32.mrf.mxu3  ;;  %v916_v57 = vpack.c.bf16 %v891_v52, %v890_v54 }
 0x115   :  { %v580_v59 = vadd.f32 %v579_v56, %v1841_v17  ;;  %v453_v3 = vpop.f32.mrf.mxu0 }
 0x116   :  { %1032 = vmatmul.bf16.gmra.mxu2 %v916_v57  ;;  %v1922_v57 = vld [vmem:[%s2006_s4] ss:$0 sm:$0xff]  ;;  %s1534_s4 = smov [#allocation6]  }
 0x117   :  { %v907_v5 = vmul.f32 %v1901_v0, %v580_v59  ;;  %v542_v6 = vpop.f32.mrf.mxu1  ;;  %s1215_s29 = sshll.u32 %s1534_s4, 4  ;;  %s1216_s29 = int_to_ptr.vmem [resolvable:$true] %s1215_s29 }
 0x118   :  { %v543_v9 = vadd.f32 %v542_v6, %v453_v3 }
 0x119   :  { %v924_v7 = vpack.c.bf16 %v907_v5, %v906_v4 }
 0x11a   :  { %v892_v17 = vmul.f32 %v1859_v42, %v543_v9 }
 0x11b   :  { %1072 = vmatmul.bf16.gmra.mxu3 %v924_v7 }
 0x11c   :  { %v582_v61 = vpop.f32.mrf.mxu3 }
 0x11d   :  { %v455_v11 = vpop.f32.mrf.mxu0  ;;  %v583_v18 = vadd.f32 %v582_v61, %v1847_v26 }
 0x11f   :  { %v544_v13 = vpop.f32.mrf.mxu1  ;;  %v908_v36 = vmul.f32 %v1913_v31, %v583_v18 }
 0x120   :  { %v545_v14 = vadd.f32 %v544_v13, %v455_v11 }
 0x122   :  { %v893_v28 = vmul.f32 %v1863_v46, %v545_v14 }
 0x124   :  { %v584_v19 = vpop.f32.mrf.mxu3  ;;  %v917_v20 = vpack.c.bf16 %v893_v28, %v892_v17 }
 0x125   :  { %v585_v29 = vadd.f32 %v584_v19, %v1857_v39  ;;  %v458_v32 = vpop.f32.mrf.mxu0 }
 0x126   :  { %1037 = vmatmul.bf16.gmra.mxu2 %v917_v20 }
 0x127   :  { %v909_v38 = vmul.f32 %v1910_v22, %v585_v29  ;;  %v547_v40 = vpop.f32.mrf.mxu1 }
 0x128   :  { %v548_v43 = vadd.f32 %v547_v40, %v458_v32 }
 0x129   :  { %v925_v37 = vpack.c.bf16 %v909_v38, %v908_v36 }
 0x12a   :  { %v894_v50 = vmul.f32 %v1861_v45, %v548_v43 }
 0x12b   :  { %1077 = vmatmul.bf16.gmra.mxu3 %v925_v37 }
 0x12d   :  { %v460_v48 = vpop.f32.mrf.mxu0 }
 0x12f   :  { %v549_v26 = vpop.f32.mrf.mxu1 }
 0x130   :  { %v550_v49 = vadd.f32 %v549_v26, %v460_v48 }
 0x132   :  { %v895_v54 = vmul.f32 %v1865_v53, %v550_v49 }
 0x134   :  { %v918_v39 = vpack.c.bf16 %v895_v54, %v894_v50 }
 0x135   :  { %v463_v52 = vpop.f32.mrf.mxu0 }
 0x136   :  { %1042 = vmatmul.bf16.gmra.mxu2 %v918_v39 }
 0x137   :  { %v552_v55 = vpop.f32.mrf.mxu1 }
 0x138   :  { %v553_v59 = vadd.f32 %v552_v55, %v463_v52 }
 0x139   :  { %v1003_v56 = vpop.f32.mrf.mxu2 }
 0x13a   :  { %v1004_v3 = vadd.f32 %v1922_v57, %v1003_v56  ;;  %v896_v61 = vmul.f32 %v1877_v8, %v553_v59 }
 0x13c   :  { %v1083_v9 = vmax.f32 %v1004_v3, 0.0 }
 0x13d   :  { %v465_v4 = vpop.f32.mrf.mxu0 }
 0x13e   :  { %v1115_v28 = vmul.f32 %v1083_v9, %v1801_v10  ;;  %v1937_v9 = vpop.permute.xlu2 %835 }
 0x13f   :  { %v554_v5 = vpop.f32.mrf.mxu1 }
 0x140   :  { %v555_v6 = vadd.f32 %v554_v5, %v465_v4 }
 0x141   :  { %v1005_v7 = vpop.f32.mrf.mxu2 }
 0x142   :  { %v897_v11 = vmul.f32 %v1879_v15, %v555_v6  ;;  %v1006_v13 = vadd.f32 %v1922_v57, %v1005_v7 }
 0x144   :  { %v1084_v14 = vmax.f32 %v1006_v13, 0.0  ;;  %v919_v17 = vpack.c.bf16 %v897_v11, %v896_v61 }
 0x145   :  { %v468_v19 = vpop.f32.mrf.mxu0 }
 0x146   :  { %v1116_v18 = vmul.f32 %v1084_v14, %v1805_v21  ;;  %1047 = vmatmul.bf16.gmra.mxu2 %v919_v17 }
 0x147   :  { %v557_v20 = vpop.f32.mrf.mxu1 }
 0x148   :  { %v1353_v29 = vpack.c.bf16 %v1116_v18, %v1115_v28  ;;  %v558_v36 = vadd.f32 %v557_v20, %v468_v19 }
 0x149   :  { %v1008_v32 = vpop.f32.mrf.mxu2 }
 0x14a   :  { %1354 = vst [vmem:[#allocation6] sm:$0xff] %v1353_v29   ;;  %v1009_v38 = vadd.f32 %v1922_v57, %v1008_v32  ;;  %v898_v26 = vmul.f32 %v1891_v41, %v558_v36 }
 0x14c   :  { %v1085_v49 = vmax.f32 %v1009_v38, 0.0 }
 0x14d   :  { %v470_v40 = vpop.f32.mrf.mxu0 }
 0x14e   :  { %v1117_v39 = vmul.f32 %v1085_v49, %v1811_v33 }
 0x14f   :  { %v559_v37 = vpop.f32.mrf.mxu1 }
 0x150   :  { %v560_v43 = vadd.f32 %v559_v37, %v470_v40 }
 0x151   :  { %v1010_v48 = vpop.f32.mrf.mxu2 }
 0x152   :  { %v899_v10 = vmul.f32 %v1893_v51, %v560_v43  ;;  %v1011_v21 = vadd.f32 %v1922_v57, %v1010_v48 }
 0x154   :  { %v1086_v50 = vmax.f32 %v1011_v21, 0.0  ;;  %v920_v54 = vpack.c.bf16 %v899_v10, %v898_v26 }
 0x155   :  { %v473_v55 = vpop.f32.mrf.mxu0 }
 0x156   :  { %v1118_v52 = vmul.f32 %v1086_v50, %v1823_v47  ;;  %1052 = vmatmul.bf16.gmra.mxu2 %v920_v54 }
 0x157   :  { %v562_v56 = vpop.f32.mrf.mxu1 }
 0x158   :  { %v1358_v59 = vpack.c.bf16 %v1118_v52, %v1117_v39  ;;  %v563_v4 = vadd.f32 %v562_v56, %v473_v55 }
 0x159   :  { %v1013_v3 = vpop.f32.mrf.mxu2 }
 0x15a   :  { %1430 = vst [vmem:[#allocation6 + $0x8] sm:$0xff] %v1358_v59   ;;  %v1014_v5 = vadd.f32 %v1922_v57, %v1013_v3  ;;  %v900_v13 = vmul.f32 %v1905_v12, %v563_v4 }
 0x15c   :  { %v1087_v33 = vmax.f32 %v1014_v5, 0.0 }
 0x15d   :  { %v475_v6 = vpop.f32.mrf.mxu0 }
 0x15e   :  { %v1119_v18 = vmul.f32 %v1087_v33, %v1821_v44 }
 0x15f   :  { %v564_v7 = vpop.f32.mrf.mxu1 }
 0x160   :  { %v565_v61 = vadd.f32 %v564_v7, %v475_v6 }
 0x161   :  { %v1015_v11 = vpop.f32.mrf.mxu2 }
 0x162   :  { %v901_v47 = vmul.f32 %v1937_v9, %v565_v61  ;;  %v1016_v14 = vadd.f32 %v1922_v57, %v1015_v11 }
 0x164   :  { %v1088_v17 = vmax.f32 %v1016_v14, 0.0  ;;  %v921_v28 = vpack.c.bf16 %v901_v47, %v900_v13 }
 0x166   :  { %v1120_v19 = vmul.f32 %v1088_v17, %v1829_v60  ;;  %1057 = vmatmul.bf16.gmra.mxu2 %v921_v28 }
 0x168   :  { %v1363_v20 = vpack.c.bf16 %v1120_v19, %v1119_v18 }
 0x169   :  { %v1018_v29 = vpop.f32.mrf.mxu2 }
 0x16a   :  { %1431 = vst [vmem:[#allocation6 + $0x10] sm:$0xff] %v1363_v20   ;;  %v1019_v32 = vadd.f32 %v1922_v57, %v1018_v29 }
 0x16c   :  { %v1089_v38 = vmax.f32 %v1019_v32, 0.0 }
 0x16e   :  { %v1121_v43 = vmul.f32 %v1089_v38, %v1835_v1 }
 0x171   :  { %v1020_v36 = vpop.f32.mrf.mxu2 }
 0x172   :  { %v1021_v40 = vadd.f32 %v1922_v57, %v1020_v36 }
 0x174   :  { %v1090_v37 = vmax.f32 %v1021_v40, 0.0 }
 0x176   :  { %v1122_v48 = vmul.f32 %v1090_v37, %v1833_v62 }
 0x178   :  { %v1368_v26 = vpack.c.bf16 %v1122_v48, %v1121_v43 }
 0x179   :  { %v1023_v49 = vpop.f32.mrf.mxu2 }
 0x17a   :  { %1432 = vst [vmem:[#allocation6 + $0x18] sm:$0xff] %v1368_v26   ;;  %v1024_v44 = vadd.f32 %v1922_v57, %v1023_v49 }
 0x17c   :  { %v1091_v21 = vmax.f32 %v1024_v44, 0.0 }
 0x17e   :  { %v1063_v60 = vpop.f32.mrf.mxu3  ;;  %v1123_v52 = vmul.f32 %v1091_v21, %v1839_v16 }
 0x17f   :  { %v1064_v54 = vadd.f32 %v1922_v57, %v1063_v60 }
 0x181   :  { %v1025_v10 = vpop.f32.mrf.mxu2  ;;  %v1107_v56 = vmax.f32 %v1064_v54, 0.0 }
 0x182   :  { %v1026_v50 = vadd.f32 %v1922_v57, %v1025_v10 }
 0x183   :  { %v1139_v5 = vmul.f32 %v1107_v56, %v1873_v2 }
 0x184   :  { %v1092_v39 = vmax.f32 %v1026_v50, 0.0 }
 0x186   :  { %v1124_v55 = vmul.f32 %v1092_v39, %v1845_v25  ;;  %v1065_v1 = vpop.f32.mrf.mxu3 }
 0x187   :  { %v1066_v62 = vadd.f32 %v1922_v57, %v1065_v1 }
 0x188   :  { %v1373_v59 = vpack.c.bf16 %v1124_v55, %v1123_v52 }
 0x189   :  { %v1108_v3 = vmax.f32 %v1066_v62, 0.0  ;;  %v1028_v4 = vpop.f32.mrf.mxu2 }
 0x18a   :  { %1433 = vst [vmem:[#allocation6 + $0x20] sm:$0xff] %v1373_v59   ;;  %v1029_v61 = vadd.f32 %v1922_v57, %v1028_v4 }
 0x18b   :  { %v1140_v6 = vmul.f32 %v1108_v3, %v1870_v63 }
 0x18c   :  { %v1093_v13 = vmax.f32 %v1029_v61, 0.0 }
 0x18d   :  { %v1413_v7 = vpack.c.bf16 %v1140_v6, %v1139_v5 }
 0x18e   :  { %v1068_v11 = vpop.f32.mrf.mxu3  ;;  %v1125_v14 = vmul.f32 %v1093_v13, %v1843_v23 }
 0x18f   :  { %1441 = vst [vmem:[#allocation6 + $0x60] sm:$0xff] %v1413_v7   ;;  %v1069_v33 = vadd.f32 %v1922_v57, %v1068_v11 }
 0x191   :  { %v1030_v16 = vpop.f32.mrf.mxu2  ;;  %v1109_v2 = vmax.f32 %v1069_v33, 0.0 }
 0x192   :  { %v1031_v25 = vadd.f32 %v1922_v57, %v1030_v16 }
 0x193   :  { %v1141_v29 = vmul.f32 %v1109_v2, %v1887_v30 }
 0x194   :  { %v1094_v47 = vmax.f32 %v1031_v25, 0.0 }
 0x196   :  { %v1126_v17 = vmul.f32 %v1094_v47, %v1849_v27  ;;  %v1070_v28 = vpop.f32.mrf.mxu3 }
 0x197   :  { %v1071_v63 = vadd.f32 %v1922_v57, %v1070_v28 }
 0x198   :  { %v1378_v18 = vpack.c.bf16 %v1126_v17, %v1125_v14 }
 0x199   :  { %v1110_v19 = vmax.f32 %v1071_v63, 0.0  ;;  %v1033_v20 = vpop.f32.mrf.mxu2 }
 0x19a   :  { %1434 = vst [vmem:[#allocation6 + $0x28] sm:$0xff] %v1378_v18   ;;  %v1034_v38 = vadd.f32 %v1922_v57, %v1033_v20 }
 0x19b   :  { %v1142_v32 = vmul.f32 %v1110_v19, %v1884_v24 }
 0x19c   :  { %v1095_v37 = vmax.f32 %v1034_v38, 0.0 }
 0x19d   :  { %v1418_v36 = vpack.c.bf16 %v1142_v32, %v1141_v29 }
 0x19e   :  { %v1073_v40 = vpop.f32.mrf.mxu3  ;;  %v1127_v26 = vmul.f32 %v1095_v37, %v1853_v35 }
 0x19f   :  { %1442 = vst [vmem:[#allocation6 + $0x68] sm:$0xff] %v1418_v36   ;;  %v1074_v43 = vadd.f32 %v1922_v57, %v1073_v40 }
 0x1a1   :  { %v1035_v23 = vpop.f32.mrf.mxu2  ;;  %v1111_v30 = vmax.f32 %v1074_v43, 0.0 }
 0x1a2   :  { %v1036_v27 = vadd.f32 %v1922_v57, %v1035_v23 }
 0x1a3   :  { %v1143_v50 = vmul.f32 %v1111_v30, %v1898_v58 }
 0x1a4   :  { %v1096_v48 = vmax.f32 %v1036_v27, 0.0 }
 0x1a6   :  { %v1128_v49 = vmul.f32 %v1096_v48, %v1851_v34  ;;  %v1075_v44 = vpop.f32.mrf.mxu3 }
 0x1a7   :  { %v1076_v24 = vadd.f32 %v1922_v57, %v1075_v44 }
 0x1a8   :  { %v1383_v60 = vpack.c.bf16 %v1128_v49, %v1127_v26 }
 0x1a9   :  { %v1112_v10 = vmax.f32 %v1076_v24, 0.0  ;;  %v1038_v21 = vpop.f32.mrf.mxu2 }
 0x1aa   :  { %1435 = vst [vmem:[#allocation6 + $0x30] sm:$0xff] %v1383_v60   ;;  %v1039_v52 = vadd.f32 %v1922_v57, %v1038_v21 }
 0x1ab   :  { %v1144_v54 = vmul.f32 %v1112_v10, %v1901_v0 }
 0x1ac   :  { %v1097_v1 = vmax.f32 %v1039_v52, 0.0 }
 0x1ad   :  { %v1423_v39 = vpack.c.bf16 %v1144_v54, %v1143_v50 }
 0x1ae   :  { %v1078_v55 = vpop.f32.mrf.mxu3  ;;  %v1129_v59 = vmul.f32 %v1097_v1, %v1859_v42 }
 0x1af   :  { %1443 = vst [vmem:[#allocation6 + $0x70] sm:$0xff] %v1423_v39   ;;  %v1079_v56 = vadd.f32 %v1922_v57, %v1078_v55 }
 0x1b1   :  { %v1040_v35 = vpop.f32.mrf.mxu2  ;;  %v1113_v58 = vmax.f32 %v1079_v56, 0.0 }
 0x1b2   :  { %v1041_v34 = vadd.f32 %v1922_v57, %v1040_v35 }
 0x1b3   :  { %v1145_v61 = vmul.f32 %v1113_v58, %v1913_v31 }
 0x1b4   :  { %v1098_v62 = vmax.f32 %v1041_v34, 0.0 }
 0x1b6   :  { %v1130_v3 = vmul.f32 %v1098_v62, %v1863_v46  ;;  %v1080_v4 = vpop.f32.mrf.mxu3 }
 0x1b7   :  { %v1081_v0 = vadd.f32 %v1922_v57, %v1080_v4 }
 0x1b8   :  { %v1388_v5 = vpack.c.bf16 %v1130_v3, %v1129_v59 }
 0x1b9   :  { %v1114_v6 = vmax.f32 %v1081_v0, 0.0  ;;  %v1043_v7 = vpop.f32.mrf.mxu2 }
 0x1ba   :  { %1436 = vst [vmem:[#allocation6 + $0x38] sm:$0xff] %v1388_v5   ;;  %v1044_v13 = vadd.f32 %v1922_v57, %v1043_v7 }
 0x1bb   :  { %v1146_v11 = vmul.f32 %v1114_v6, %v1910_v22 }
 0x1bc   :  { %v1099_v42 = vmax.f32 %v1044_v13, 0.0 }
 0x1bd   :  { %v1428_v16 = vpack.c.bf16 %v1146_v11, %v1145_v61 }
 0x1be   :  { %v1131_v47 = vmul.f32 %v1099_v42, %v1861_v45 }
 0x1bf   :  { %1444 = vst [vmem:[#allocation6 + $0x78] sm:$0xff] %v1428_v16  }
 0x1c1   :  { %v1045_v25 = vpop.f32.mrf.mxu2 }
 0x1c2   :  { %v1046_v46 = vadd.f32 %v1922_v57, %v1045_v25 }
 0x1c4   :  { %v1100_v33 = vmax.f32 %v1046_v46, 0.0 }
 0x1c6   :  { %v1132_v14 = vmul.f32 %v1100_v33, %v1865_v53 }
 0x1c8   :  { %v1393_v17 = vpack.c.bf16 %v1132_v14, %v1131_v47 }
 0x1c9   :  { %v1048_v28 = vpop.f32.mrf.mxu2 }
 0x1ca   :  { %1437 = vst [vmem:[#allocation6 + $0x40] sm:$0xff] %v1393_v17   ;;  %v1049_v31 = vadd.f32 %v1922_v57, %v1048_v28 }
 0x1cc   :  { %v1101_v22 = vmax.f32 %v1049_v31, 0.0 }
 0x1ce   :  { %v1133_v19 = vmul.f32 %v1101_v22, %v1877_v8 }
 0x1d1   :  { %v1050_v2 = vpop.f32.mrf.mxu2 }
 0x1d2   :  { %v1051_v63 = vadd.f32 %v1922_v57, %v1050_v2 }
 0x1d4   :  { %v1102_v18 = vmax.f32 %v1051_v63, 0.0 }
 0x1d6   :  { %v1134_v20 = vmul.f32 %v1102_v18, %v1879_v15 }
 0x1d8   :  { %v1398_v29 = vpack.c.bf16 %v1134_v20, %v1133_v19 }
 0x1d9   :  { %v1053_v32 = vpop.f32.mrf.mxu2 }
 0x1da   :  { %1438 = vst [vmem:[#allocation6 + $0x48] sm:$0xff] %v1398_v29   ;;  %v1054_v45 = vadd.f32 %v1922_v57, %v1053_v32 }
 0x1dc   :  { %v1103_v36 = vmax.f32 %v1054_v45, 0.0 }
 0x1de   :  { %v1135_v23 = vmul.f32 %v1103_v36, %v1891_v41 }
 0x1e1   :  { %v1055_v53 = vpop.f32.mrf.mxu2 }
 0x1e2   :  { %v1056_v38 = vadd.f32 %v1922_v57, %v1055_v53 }
 0x1e4   :  { %v1104_v40 = vmax.f32 %v1056_v38, 0.0 }
 0x1e6   :  { %v1136_v37 = vmul.f32 %v1104_v40, %v1893_v51 }
 0x1e8   :  { %v1403_v27 = vpack.c.bf16 %v1136_v37, %v1135_v23 }
 0x1e9   :  { %v1058_v43 = vpop.f32.mrf.mxu2 }
 0x1ea   :  { %1439 = vst [vmem:[#allocation6 + $0x50] sm:$0xff] %v1403_v27   ;;  %v1059_v8 = vadd.f32 %v1922_v57, %v1058_v43 }
 0x1ec   :  { %v1105_v48 = vmax.f32 %v1059_v8, 0.0 }
 0x1ee   :  { %v1137_v41 = vmul.f32 %v1105_v48, %v1905_v12 }
 0x1f1   :  { %v1060_v15 = vpop.f32.mrf.mxu2 }
 0x1f2   :  { %v1061_v26 = vadd.f32 %v1922_v57, %v1060_v15 }
 0x1f4   :  { %v1106_v49 = vmax.f32 %v1061_v26, 0.0 }
 0x1f6   :  { %v1138_v51 = vmul.f32 %v1106_v49, %v1937_v9 }
 0x1f8   :  { %v1408_v44 = vpack.c.bf16 %v1138_v51, %v1137_v41 }
 0x1fa   :  { %1440 = vst [vmem:[#allocation6 + $0x58] sm:$0xff] %v1408_v44  }
 0x1fb   :  { %1223 = dma.vmem_to_hbm [thread:$0]  %s1216_s29, 2048, %s1218_s7, [#allocation5], %s1531_s23, %s1531_s23, %s1532_s24  }
 0x1fc   :  { %1528 = dma.done.wait [#allocation5], 2048  }
 0x1fd   :  { %1529 = vsyncadd [#allocation5], 4294965248 }
 0x1fe   :  { %1228 = vsyncpa [#allocation4], 1 }
 0x1ff   :  { %1229 = vsyncpa [#allocation5], 1 }

</bundles_post_ra>
